<compile_context>
chip_gen: v7x
topology: tpu7x:2x2x1
jax: 0.10.0
libtpu: 0.0.40
codegen_flags: <defaults>
</compile_context>

<pallas_src>
import functools

import jax
import jax.numpy as jnp
from jax.experimental import pallas as pl
from jax.experimental.pallas import tpu as pltpu

_LANES = 128


def _cdiv(a, b):
    return -(-a // b)


def _round_up(a, m):
    return _cdiv(a, m) * m


def _default_config():
    """(tile_rows, num_parallel) per TPU generation; conservative fallback."""
    kind = ""
    try:
        kind = jax.devices()[0].device_kind.lower()
    except Exception:
        pass
    if ("v7" in kind) or ("7x" in kind):
        return 8192, 2          # 2 TensorCores/chip; 24 MiB double-buffered f32 inputs
    if "v6" in kind:
        return 4096, 1          # ~90%+ of HBM roofline, 12 MiB double-buffered
    return 2048, 1              # v5e / unknown: 16 MiB scoped-VMEM default, ~92% roofline


def _masked_sq_sum_kernel(x_ref, t_ref, m_ref, out_ref, *,
                          tiles_per_core, valid_rows, apply_mask):
    """Accumulates sum(((x - t) * m)^2) into a per-core (8,128) f32 output block."""
    p = pl.program_id(0)            # parallel (core) axis
    i = pl.program_id(1)            # reduction axis

    @pl.when(i == 0)
    def _init():
        out_ref[...] = jnp.zeros_like(out_ref)

    x = x_ref[...].astype(jnp.float32)
    t = t_ref[...].astype(jnp.float32)
    m = m_ref[...].astype(jnp.float32)
    d = (x - t) * m                  # == x*m - t*m
    sq = d * d                       # (tile_rows, 128) f32

    if apply_mask:
        # Zero rows past the true end of the (un-padded) input.  This also neutralizes
        # any garbage read by a partially / fully out-of-bounds last tile.
        row0 = (p * tiles_per_core + i) * sq.shape[0]
        ridx = row0 + jax.lax.broadcasted_iota(jnp.int32, sq.shape, 0)
        sq = jnp.where(ridx < valid_rows, sq, 0.0)

    r = sq.shape[0]
    fold = (r // 8) * 8
    if fold:
        # Fold sublane-tiles onto the (8,128) accumulator: pure elementwise vreg adds.
        out_ref[0] += jnp.sum(sq[:fold].reshape(fold // 8, 8, _LANES), axis=0)
    if r - fold:
        # Tiny arrays whose row count is not a multiple of 8 (full-dim blocks only).
        out_ref[0, : r - fold] += sq[fold:]


def masked_mse_loss(x, target, mask, *, tile_rows=None, num_parallel=None):
    """Pallas implementation of MaskedLoss(nn.MSELoss())(x, target, mask)."""
    assert x.shape == target.shape == mask.shape
    n_elem = x.size

    xf = x.reshape(-1)
    tf = target.reshape(-1)
    mf = mask.reshape(-1)

    n_main = (n_elem // _LANES) * _LANES
    rem = n_elem - n_main

    total = jnp.float32(0.0)
    if rem:
        # <128-element lane remainder: negligible pure-jnp epilogue (no array-wide pad).
        dx = (xf[n_main:].astype(jnp.float32) - tf[n_main:].astype(jnp.float32)) \
             * mf[n_main:].astype(jnp.float32)
        total = total + jnp.sum(dx * dx)

    if n_main:
        rows = n_main // _LANES
        # TODO(synk): when rem != 0 this static slice copies the lane-aligned body once;
        # lane-aligned inputs (the common case) take the zero-copy path below.
        if rem:
            xf, tf, mf = xf[:n_main], tf[:n_main], mf[:n_main]
        x2 = xf.reshape(rows, _LANES)
        t2 = tf.reshape(rows, _LANES)
        m2 = mf.reshape(rows, _LANES)

        cfg_tile, cfg_par = _default_config()
        if tile_rows is None:
            tile_rows = cfg_tile
        if num_parallel is None:
            num_parallel = cfg_par

        # Only split across cores if each core gets at least one 32-row tile.
        num_parallel = max(1, min(num_parallel, rows // 32))
        rows_per_core = _cdiv(rows, num_parallel)

        # Tile rows: multiple of 32 (satisfies f32/bf16/int8 block tiling) unless the
        # whole array is smaller, in which case use the full row count (always legal).
        tr = min(tile_rows, _round_up(rows_per_core, 32))
        tr = min(tr, rows)

        tiles_per_core = _cdiv(rows_per_core, tr)
        covered_rows = num_parallel * tiles_per_core * tr
        apply_mask = covered_rows > rows
        max_block = _cdiv(rows, tr) - 1   # last block index with an in-bounds start

        def in_map(p, i):
            # Clamp so every DMA stays in bounds; logically-OOB tiles are zeroed in-kernel.
            return (jnp.minimum(p * tiles_per_core + i, max_block), 0)

        in_spec = pl.BlockSpec((tr, _LANES), in_map)

        kernel = functools.partial(
            _masked_sq_sum_kernel,
            tiles_per_core=tiles_per_core,
            valid_rows=rows,
            apply_mask=apply_mask,
        )

        partials = pl.pallas_call(
            kernel,
            out_shape=jax.ShapeDtypeStruct((num_parallel, 8, _LANES), jnp.float32),
            grid_spec=pltpu.PrefetchScalarGridSpec(
                num_scalar_prefetch=0,
                grid=(num_parallel, tiles_per_core),
                in_specs=[in_spec, in_spec, in_spec],
                out_specs=pl.BlockSpec((1, 8, _LANES), lambda p, i: (p, 0, 0)),
            ),
            compiler_params=pltpu.CompilerParams(
                dimension_semantics=("parallel", "arbitrary"),
            ),
        )(x2, t2, m2)
        total = total + jnp.sum(partials)

    # MSELoss(reduction="mean") divides by the total (true) element count.
    return (total * jnp.float32(1.0 / n_elem)).astype(jnp.float32)


if __name__ == "__main__":
    key = jax.random.PRNGKey(0)
    kx, kt, km = jax.random.split(key, 3)

    # --- Main demo: NCHW tensors, lane-aligned (zero-copy path), narrow int8 mask. ---
    B, C, H, W = 2, 4, 16, 16
    x = jax.random.normal(kx, (B, C, H, W), dtype=jnp.float32)
    target = jax.random.normal(kt, (B, C, H, W), dtype=jnp.float32)
    mask = (jax.random.uniform(km, (B, C, H, W)) > 0.5).astype(jnp.int8)

    loss = masked_mse_loss(x, target, mask)
    jax.block_until_ready(loss)

    ref = jnp.mean(((x - target) * mask.astype(jnp.float32)) ** 2)
    assert jnp.allclose(loss, ref, rtol=1e-4, atol=1e-6), (loss, ref)

    # --- Check 2: multi-tile grid with ragged tail + clamped/masked OOB tiles. ---
    k2 = jax.random.split(key, 7)
    x2 = jax.random.normal(k2[0], (4, 4, 40, 128), dtype=jnp.float32)
    t2 = jax.random.normal(k2[1], (4, 4, 40, 128), dtype=jnp.float32)
    m2 = (jax.random.uniform(k2[2], (4, 4, 40, 128)) > 0.5).astype(jnp.int8)
    loss2 = masked_mse_loss(x2, t2, m2, tile_rows=256, num_parallel=2)
    jax.block_until_ready(loss2)
    ref2 = jnp.mean(((x2 - t2) * m2.astype(jnp.float32)) ** 2)
    assert jnp.allclose(loss2, ref2, rtol=1e-4, atol=1e-6), (loss2, ref2)

    # --- Check 3: lane-unaligned size (jnp epilogue) + tiny sub-8-row block. ---
    x3 = jax.random.normal(k2[3], (3, 133), dtype=jnp.float32)
    t3 = jax.random.normal(k2[4], (3, 133), dtype=jnp.float32)
    m3 = (jax.random.uniform(k2[5], (3, 133)) > 0.5).astype(jnp.float32)
    loss3 = masked_mse_loss(x3, t3, m3)
    jax.block_until_ready(loss3)
    ref3 = jnp.mean(((x3 - t3) * m3) ** 2)
    assert jnp.allclose(loss3, ref3, rtol=1e-4, atol=1e-6), (loss3, ref3)

    print("KERNEL_OK")
</pallas_src>

<mosaic_0001>
module attributes {stable_mosaic.version = 11 : i64} {
  func.func @_masked_sq_sum_kernel(%arg0: i32, %arg1: i32, %arg2: memref<16x128xf32, #tpu.memory_space<vmem>>, %arg3: memref<16x128xf32, #tpu.memory_space<vmem>>, %arg4: memref<16x128xi8, #tpu.memory_space<vmem>>, %arg5: memref<1x8x128xf32, #tpu.memory_space<vmem>>) attributes {dimension_semantics = [#tpu.dimension_semantics<parallel>, #tpu.dimension_semantics<arbitrary>], iteration_bounds = array<i64: 1, 1>, scalar_prefetch = 0 : i64, scratch_operands = 0 : i64, tpu.core_type = #tpu.core_type<tc>, window_params = [{transform_indices = @transform_0, window_bounds = array<i64: 16, 128>}, {transform_indices = @transform_1, window_bounds = array<i64: 16, 128>}, {transform_indices = @transform_2, window_bounds = array<i64: 16, 128>}, {transform_indices = @transform_3, window_bounds = array<i64: 1, 8, 128>}]} {
    %c0_i32 = arith.constant 0 : i32
    %0 = arith.cmpi eq, %arg1, %c0_i32 : i32
    %1 = arith.extui %0 : i1 to i32
    %c0_i32_0 = arith.constant 0 : i32
    %2 = arith.cmpi ne, %1, %c0_i32_0 : i32
    scf.if %2 {
      %cst_12 = arith.constant 0.000000e+00 : f32
      %18 = vector.broadcast %cst_12 : f32 to vector<1x8x128xf32>
      %c0_13 = arith.constant 0 : index
      %c0_14 = arith.constant 0 : index
      %c0_15 = arith.constant 0 : index
      %19 = vector.load %arg5[%c0_13, %c0_14, %c0_15] : memref<1x8x128xf32, #tpu.memory_space<vmem>>, vector<1x8x128xf32>
      tpu.vector_store %arg5[%c0_13, %c0_14, %c0_15], %18 {strides = array<i32>} : memref<1x8x128xf32, #tpu.memory_space<vmem>>, vector<1x8x128xf32>,
    } else {
    }
    %c0 = arith.constant 0 : index
    %c0_1 = arith.constant 0 : index
    %3 = vector.load %arg2[%c0, %c0_1] : memref<16x128xf32, #tpu.memory_space<vmem>>, vector<16x128xf32>
    %c0_2 = arith.constant 0 : index
    %c0_3 = arith.constant 0 : index
    %4 = vector.load %arg3[%c0_2, %c0_3] : memref<16x128xf32, #tpu.memory_space<vmem>>, vector<16x128xf32>
    %c0_4 = arith.constant 0 : index
    %c0_5 = arith.constant 0 : index
    %5 = vector.load %arg4[%c0_4, %c0_5] : memref<16x128xi8, #tpu.memory_space<vmem>>, vector<16x128xi8>
    %6 = arith.sitofp %5 : vector<16x128xi8> to vector<16x128xf32>
    %7 = arith.subf %3, %4 : vector<16x128xf32>
    %8 = arith.mulf %7, %6 : vector<16x128xf32>
    %9 = arith.mulf %8, %8 : vector<16x128xf32>
    %c0_6 = arith.constant 0 : index
    %c0_7 = arith.constant 0 : index
    %c0_8 = arith.constant 0 : index
    %10 = vector.load %arg5[%c0_6, %c0_7, %c0_8] : memref<1x8x128xf32, #tpu.memory_space<vmem>>, vector<1x8x128xf32>
    %11 = vector.shape_cast %10 : vector<1x8x128xf32> to vector<8x128xf32>
    %12 = vector.shape_cast %9 : vector<16x128xf32> to vector<2x8x128xf32>
    %cst = arith.constant dense<0.000000e+00> : vector<8x128xf32>
    %13 = vector.multi_reduction <add>, %12, %cst [0] : vector<2x8x128xf32> to vector<8x128xf32>
    %14 = arith.addf %11, %13 : vector<8x128xf32>
    %c0_9 = arith.constant 0 : index
    %c0_10 = arith.constant 0 : index
    %c0_11 = arith.constant 0 : index
    %15 = vector.load %arg5[%c0_9, %c0_10, %c0_11] : memref<1x8x128xf32, #tpu.memory_space<vmem>>, vector<1x8x128xf32>
    %16 = vector.shape_cast %15 : vector<1x8x128xf32> to vector<8x128xf32>
    %17 = vector.shape_cast %14 : vector<8x128xf32> to vector<1x8x128xf32>
    tpu.vector_store %arg5[%c0_9, %c0_10, %c0_11], %17 {strides = array<i32>} : memref<1x8x128xf32, #tpu.memory_space<vmem>>, vector<1x8x128xf32>,
    return
  }
  func.func @transform_0(%arg0: i32, %arg1: i32) -> (i32, i32) {
    %c1_i32 = arith.constant 1 : i32
    %0 = arith.muli %arg0, %c1_i32 : i32
    %1 = arith.addi %0, %arg1 : i32
    %c0_i32 = arith.constant 0 : i32
    %2 = arith.minsi %1, %c0_i32 : i32
    %c0_i32_0 = arith.constant 0 : i32
    %c0_i32_1 = arith.constant 0 : i32
    return %2, %c0_i32_0 : i32, i32
  }
  func.func @transform_1(%arg0: i32, %arg1: i32) -> (i32, i32) {
    %c1_i32 = arith.constant 1 : i32
    %0 = arith.muli %arg0, %c1_i32 : i32
    %1 = arith.addi %0, %arg1 : i32
    %c0_i32 = arith.constant 0 : i32
    %2 = arith.minsi %1, %c0_i32 : i32
    %c0_i32_0 = arith.constant 0 : i32
    %c0_i32_1 = arith.constant 0 : i32
    return %2, %c0_i32_0 : i32, i32
  }
  func.func @transform_2(%arg0: i32, %arg1: i32) -> (i32, i32) {
    %c1_i32 = arith.constant 1 : i32
    %0 = arith.muli %arg0, %c1_i32 : i32
    %1 = arith.addi %0, %arg1 : i32
    %c0_i32 = arith.constant 0 : i32
    %2 = arith.minsi %1, %c0_i32 : i32
    %c0_i32_0 = arith.constant 0 : i32
    %c0_i32_1 = arith.constant 0 : i32
    return %2, %c0_i32_0 : i32, i32
  }
  func.func @transform_3(%arg0: i32, %arg1: i32) -> (i32, i32, i32) {
    %c0_i32 = arith.constant 0 : i32
    %c0_i32_0 = arith.constant 0 : i32
    %c0_i32_1 = arith.constant 0 : i32
    return %arg0, %c0_i32, %c0_i32_0 : i32, i32, i32
  }
}

</mosaic_0001>

<bundles_post_ra>
// kernel: tpu_custom_call.1
= control target key start
LH: loop header
LB: loop body
LE: loop exit
PB: predicated region body
PF: predicated region fallthrough
CT: control target
= control target key end

     0   :  { %8 = vsyncpa [#allocation3], 0  ;;  %s292_s0 = inlined_call_operand.hbm [shape: f32[16,128], index: 0, kind: input, shape index: {}]   ;;  %s293_s1 = inlined_call_operand.hbm [shape: f32[16,128], index: 1, kind: input, shape index: {}]   ;;  %s294_s2 = inlined_call_operand.vmem [shape: s8[16,128], index: 2, kind: input, shape index: {}]   ;;  %s295_s3 = inlined_call_operand.hbm [shape: f32[1,8,128], index: 3, kind: output, shape index: {}]  }
   0x1   :  { %9 = vsyncpa [#allocation6], 0 }
   0x2   :  { %10 = vsyncpa [#allocation4], 0  ;;  %s228_s12 = smov [#allocation2]   ;;  %s156_s16 = scalar_lea.hbm %s292_s0, 256 }
   0x3   :  { %s22_s13 = sshll.u32 %s228_s12, 4  ;;  %p157_p0 = scmp.ne.s32.totalorder %s292_s0, %s156_s16  ;;  %s23_s13 = int_to_ptr.vmem [resolvable:$true] %s22_s13 }
   0x4   :  { %p160_p1 = scmp.lt.u32.totalorder %s156_s16, %s292_s0 }
   0x6   :  { %p162_p2 = pnand %p160_p1, %p157_p0 }
   0x8   :  { %165 = shalt.err (!%p162_p2)
}
   0x9   :  { %s166_s21 = scalar_lea.vmem %s23_s13, 256  ;;  %p171_p4 = scmp.lt.s32.totalorder %s23_s13, %s23_s13 }
   0xa   :  { %p167_p3 = scmp.ne.s32.totalorder %s23_s13, %s166_s21  ;;  %p172_p5 = scmp.lt.s32.totalorder %s166_s21, %s166_s21 }
   0xc   :  { %p173_p6 = por %p172_p5, %p171_p4 }
   0xe   :  { %p174_p7 = pnand %p173_p6, %p167_p3 }
  0x10   :  { %177 = shalt.err (!%p174_p7)
}
  0x11   :  { %s229_s22 = smov 128   ;;  %s230_s23 = smov 8  }
  0x12   :  { %28 = dma.hbm_to_vmem [thread:$0]  %s292_s0, 256, %s23_s13, [#allocation3], %s229_s22, %s229_s22, %s230_s23  }
  0x13   :  { %s231_s26 = smov [#allocation5]   ;;  %s178_s30 = scalar_lea.hbm %s293_s1, 256 }
  0x14   :  { %s40_s27 = sshll.u32 %s231_s26, 4  ;;  %p179_p8 = scmp.ne.s32.totalorder %s293_s1, %s178_s30  ;;  %s41_s27 = int_to_ptr.vmem [resolvable:$true] %s40_s27 }
  0x15   :  { %p182_p9 = scmp.lt.u32.totalorder %s178_s30, %s293_s1 }
  0x17   :  { %p184_p10 = pnand %p182_p9, %p179_p8 }
  0x19   :  { %187 = shalt.err (!%p184_p10)
}
  0x1a   :  { %s188_s8 = scalar_lea.vmem %s41_s27, 256  ;;  %p193_p12 = scmp.lt.s32.totalorder %s41_s27, %s41_s27 }
  0x1b   :  { %p189_p11 = scmp.ne.s32.totalorder %s41_s27, %s188_s8  ;;  %p194_p13 = scmp.lt.s32.totalorder %s188_s8, %s188_s8 }
  0x1d   :  { %p195_p0 = por %p194_p13, %p193_p12 }
  0x1f   :  { %p196_p1 = pnand %p195_p0, %p189_p11 }
  0x21   :  { %199 = shalt.err (!%p196_p1)
}
  0x22   :  { %46 = dma.hbm_to_vmem [thread:$0]  %s293_s1, 256, %s41_s27, [#allocation6], %s229_s22, %s229_s22, %s230_s23  }
  0x23   :  { %222 = dma.done.wait [#allocation3], 256  }
  0x24   :  { %223 = vsyncadd [#allocation3], 4294967040 }
  0x25   :  { %224 = dma.done.wait [#allocation6], 256  }
  0x26   :  { %225 = vsyncadd [#allocation6], 4294967040  ;;  %v100_v0 = vld [vmem:[#allocation2] sm:$0xff]  ;;  %v101_v1 = vld [vmem:[#allocation2 + $0x8] sm:$0xff]  ;;  %s232_s1 = smov [#allocation7]  }
  0x27   :  { %v102_v2 = vld [vmem:[#allocation5] sm:$0xff]  ;;  %v103_v3 = vld [vmem:[#allocation5 + $0x8] sm:$0xff]  ;;  %v147_v4 = vld [vmem:[%s294_s2] sm:$0xf]   ;;  %s126_s12 = sshll.u32 %s232_s1, 4  ;;  %s127_s12 = int_to_ptr.vmem [resolvable:$true] %s126_s12 }
  0x28   :  { %v148_v5 = vunpack.c.0.s8 %v147_v4  ;;  %v149_v6 = vunpack.c.1.s8 %v147_v4  ;;  %v110_v7 = vsub.f32 %v100_v0, %v102_v2  ;;  %v111_v8 = vsub.f32 %v101_v1, %v103_v3  ;;  %s200_s13 = scalar_lea.vmem %s127_s12, 128  ;;  %p205_p3 = scmp.lt.s32.totalorder %s127_s12, %s127_s12 }
  0x29   :  { %p201_p2 = scmp.ne.s32.totalorder %s127_s12, %s200_s13  ;;  %p206_p4 = scmp.lt.s32.totalorder %s200_s13, %s200_s13 }
  0x2a   :  { %v108_v9 = vcvt.s32.f32 %v148_v5  ;;  %v109_v10 = vcvt.s32.f32 %v149_v6 }
  0x2b   :  { %p207_p5 = por %p206_p4, %p205_p3 }
  0x2c   :  { %v112_v11 = vmul.f32 %v110_v7, %v108_v9  ;;  %v113_v12 = vmul.f32 %v111_v8, %v109_v10 }
  0x2d   :  { %p208_p6 = pnand %p207_p5, %p201_p2 }
  0x2e   :  { %v114_v13 = vmul.f32 %v112_v11, %v112_v11  ;;  %v115_v14 = vmul.f32 %v113_v12, %v113_v12 }
  0x30   :  { %v117_v15 = vadd.f32 %v115_v14, %v114_v13 }
  0x32   :  { %119 = vst [vmem:[#allocation7] sm:$0xff] %v117_v15 }
  0x33   :  { %211 = shalt.err (!%p208_p6)
}
  0x34   :  { %s212_s15 = scalar_lea.hbm %s295_s3, 128 }
  0x35   :  { %p213_p7 = scmp.ne.s32.totalorder %s295_s3, %s212_s15  ;;  %p216_p8 = scmp.lt.u32.totalorder %s212_s15, %s295_s3 }
  0x37   :  { %p218_p9 = pnand %p216_p8, %p213_p7 }
  0x39   :  { %221 = shalt.err (!%p218_p9)
}
  0x3a   :  { %129 = dma.vmem_to_hbm [thread:$0]  %s127_s12, 128, %s295_s3, [#allocation4]  }
  0x3b   :  { %226 = dma.done.wait [#allocation4], 128  }
  0x3c   :  { %227 = vsyncadd [#allocation4], 4294967168 }
  0x3d   :  { %133 = vsyncpa [#allocation3], 1 }
  0x3e   :  { %134 = vsyncpa [#allocation6], 1 }
  0x3f   :  { %135 = vsyncpa [#allocation4], 1 }

</bundles_post_ra>
